<compile_context>
chip_gen: v7x
topology: tpu7x:2x2x1
jax: 0.10.0
libtpu: 0.0.40
codegen_flags: <defaults>
</compile_context>

<pallas_src>
import functools
import math

import jax
import jax.numpy as jnp
from jax.experimental import pallas as pl
from jax.experimental.pallas import tpu as pltpu

MATMUL_DTYPE = jnp.bfloat16      # MXU operand + activation storage dtype
BN_EPS = 1e-5                    # nn.BatchNorm2d default
NORM_EPS = 1e-12                 # F.normalize default


def _round_up(a, b):
    return (a + b - 1) // b * b


# ---------------------------------------------------------------------------
# Generation-aware tuning knobs (queried once at import; safe fallbacks)
# ---------------------------------------------------------------------------
def _vmem_capacity_bytes():
    default = 64 * 1024 * 1024                      # conservative (v7x per-TC)
    try:
        if hasattr(pltpu, "get_tpu_info"):
            info = pltpu.get_tpu_info()
            cap = getattr(info, "vmem_capacity_bytes", None)
            if cap:
                return int(cap)
    except Exception:
        pass
    return default


_VMEM_CAP = _vmem_capacity_bytes()
# Leave headroom for Mosaic internal scratch / semaphores (never the full VMEM).
_VMEM_LIMIT = min(int(_VMEM_CAP * 0.7), 100 * 1024 * 1024)
# Deeper K-chunks on 128-MiB VMEM chips (v5e/v6e); 512 on 64-MiB v7x.
_TK_MAX = 1024 if _VMEM_CAP >= 96 * 1024 * 1024 else 512


# ---------------------------------------------------------------------------
# Tile geometry
# ---------------------------------------------------------------------------
def _pick_tk(K, tk_max):
    """K-chunk width: multiple of 128, <= tk_max; balance padded work vs #steps."""
    k128 = _round_up(K, 128)
    if k128 <= tk_max:
        return k128
    best_tk, best_cost = 128, None
    tk = tk_max
    while tk >= 128:
        kp = _round_up(k128, tk)
        cost = kp + (kp // tk) * 64            # padded K + per-step overhead equiv.
        if best_cost is None or cost < best_cost:
            best_cost, best_tk = cost, tk
        tk -= 128
    return best_tk


def _gemm_geometry(K, C):
    tk = _pick_tk(K, _TK_MAX)
    Kp = _round_up(_round_up(K, 128), tk)      # pad K up to a multiple of tk
    Cp = _round_up(C, 128)                     # lane-dense channel axis
    return tk, Kp, Cp


def _pick_tm(M):
    """MXU-friendly row tile; >=2 blocks on the parallel M axis when M > 128."""
    if M <= 128:
        return max(_round_up(M, 8), 8)
    if M <= 256:
        return 128
    if M <= 512:
        return 256
    return 512


# ---------------------------------------------------------------------------
# Fused GEMM kernel:  out = act((x @ w) * scale + shift [+ residual])
# ---------------------------------------------------------------------------
def _gemm_kernel(x_ref, w_ref, sb_ref, *rest, apply_relu, has_residual):
    if has_residual:
        res_ref, o_ref, acc_ref = rest
    else:
        o_ref, acc_ref = rest
    k = pl.program_id(1)

    part = jnp.dot(x_ref[...], w_ref[...], preferred_element_type=jnp.float32)

    @pl.when(k == 0)
    def _():
        acc_ref[...] = part                    # first step: no zero-fill + RMW

    @pl.when(k > 0)
    def _():
        acc_ref[...] += part

    @pl.when(k == pl.num_programs(1) - 1)
    def _():
        y = acc_ref[...] * sb_ref[0:1, :] + sb_ref[1:2, :]   # folded BN (or bias)
        if has_residual:
            y = y + res_ref[...].astype(jnp.float32)         # bf16 residual, f32 add
        if apply_relu:
            y = jnp.maximum(y, 0.0)
        o_ref[...] = y.astype(o_ref.dtype)                   # single bf16 store


_GEMM_KERNELS = {
    (relu, res): functools.partial(_gemm_kernel, apply_relu=relu, has_residual=res)
    for relu in (False, True)
    for res in (False, True)
}


@functools.partial(jax.jit, static_argnames=("C", "relu"))
def fused_gemm(x, wp, sb, C, residual=None, relu=True):
    """x: (M, K); wp: (Kp, Cp) bf16 pre-padded; sb: (2, Cp) f32 [scale; shift].
    Returns (M, C) bf16."""
    M, K = x.shape
    tk, Kp, Cp = _gemm_geometry(K, C)
    assert wp.shape == (Kp, Cp), (wp.shape, (Kp, Cp))
    tm = _pick_tm(M)
    Mp = _round_up(M, tm)

    xp = jnp.pad(x.astype(MATMUL_DTYPE), ((0, Mp - M), (0, Kp - K)))

    has_res = residual is not None
    operands = [xp, wp, sb]
    in_specs = [
        pl.BlockSpec((tm, tk), lambda i, k: (i, k)),     # activation tile
        pl.BlockSpec((tk, Cp), lambda i, k: (k, 0)),     # weight K-chunk (pipelined)
        pl.BlockSpec((2, Cp), lambda i, k: (0, 0)),      # folded scale/shift
    ]
    if has_res:
        operands.append(
            jnp.pad(residual.astype(MATMUL_DTYPE), ((0, Mp - M), (0, Cp - C))))
        in_specs.append(pl.BlockSpec((tm, Cp), lambda i, k: (i, 0)))

    out = pl.pallas_call(
        _GEMM_KERNELS[(relu, has_res)],
        out_shape=jax.ShapeDtypeStruct((Mp, Cp), MATMUL_DTYPE),
        grid_spec=pltpu.PrefetchScalarGridSpec(
            num_scalar_prefetch=0,
            grid=(Mp // tm, Kp // tk),               # reduction (K) axis innermost
            in_specs=in_specs,
            out_specs=pl.BlockSpec((tm, Cp), lambda i, k: (i, 0)),
            scratch_shapes=[pltpu.VMEM((tm, Cp), jnp.float32)],
        ),
        compiler_params=pltpu.CompilerParams(
            dimension_semantics=("parallel", "arbitrary"),
            vmem_limit_bytes=_VMEM_LIMIT,
        ),
    )(*operands)
    return out[:M, :C]


# ---------------------------------------------------------------------------
# Global average pool (tiled over N and H*W) and L2-normalize kernels
# ---------------------------------------------------------------------------
def _gap_kernel(x_ref, o_ref, acc_ref, *, inv_hw):
    j = pl.program_id(1)
    s = jnp.sum(x_ref[...].astype(jnp.float32), axis=1)

    @pl.when(j == 0)
    def _():
        acc_ref[...] = s

    @pl.when(j > 0)
    def _():
        acc_ref[...] += s

    @pl.when(j == pl.num_programs(1) - 1)
    def _():
        o_ref[...] = acc_ref[...] * inv_hw


@jax.jit
def global_avg_pool(x_nhwc):
    N, H, W, C = x_nhwc.shape
    HW = H * W
    Cp = _round_up(C, 128)
    if N <= 128:
        tn, Np = N, N
    else:
        tn, Np = 128, _round_up(N, 128)
    thw = min(_round_up(HW, 8), 512)
    HWp = _round_up(HW, thw)

    x3 = x_nhwc.reshape(N, HW, C).astype(MATMUL_DTYPE)
    x3 = jnp.pad(x3, ((0, Np - N), (0, HWp - HW), (0, Cp - C)))   # zeros: sum-safe

    out = pl.pallas_call(
        functools.partial(_gap_kernel, inv_hw=float(1.0 / HW)),
        out_shape=jax.ShapeDtypeStruct((Np, Cp), jnp.float32),
        grid_spec=pltpu.PrefetchScalarGridSpec(
            num_scalar_prefetch=0,
            grid=(Np // tn, HWp // thw),
            in_specs=[pl.BlockSpec((tn, thw, Cp), lambda i, j: (i, j, 0))],
            out_specs=pl.BlockSpec((tn, Cp), lambda i, j: (i, 0)),
            scratch_shapes=[pltpu.VMEM((tn, Cp), jnp.float32)],
        ),
        compiler_params=pltpu.CompilerParams(
            dimension_semantics=("parallel", "arbitrary"),
            vmem_limit_bytes=_VMEM_LIMIT,
        ),
    )(x3)
    return out[:N, :C]


def _l2norm_kernel(x_ref, o_ref):
    x = x_ref[...].astype(jnp.float32)
    nrm = jnp.sqrt(jnp.sum(x * x, axis=-1, keepdims=True))
    o_ref[...] = x / jnp.maximum(nrm, NORM_EPS)


@jax.jit
def l2_normalize(x):
    N, D = x.shape
    return pl.pallas_call(
        _l2norm_kernel,
        out_shape=jax.ShapeDtypeStruct((N, D), jnp.float32),
        grid_spec=pltpu.PrefetchScalarGridSpec(
            num_scalar_prefetch=0, grid=(1,),
            in_specs=[pl.BlockSpec((N, D), lambda i: (0, 0))],
            out_specs=pl.BlockSpec((N, D), lambda i: (0, 0)),
        ),
    )(x)


# ---------------------------------------------------------------------------
# Conv-as-GEMM plumbing (im2col is pure data movement, done in bf16)
# ---------------------------------------------------------------------------
def _im2col(x, kh, kw, stride, padding):
    N, H, W, C = x.shape
    if padding:
        x = jnp.pad(x, ((0, 0), (padding, padding), (padding, padding), (0, 0)))
    Ho = (H + 2 * padding - kh) // stride + 1
    Wo = (W + 2 * padding - kw) // stride + 1
    cols = []
    for i in range(kh):
        for j in range(kw):
            cols.append(x[:, i:i + stride * Ho:stride, j:j + stride * Wo:stride, :])
    patches = jnp.concatenate(cols, axis=-1) if len(cols) > 1 else cols[0]
    return patches.reshape(N * Ho * Wo, kh * kw * C), Ho, Wo


def conv_bn(gemm, x, conv, relu=True, residual=None):
    N = x.shape[0]
    patches, Ho, Wo = _im2col(x, conv["kh"], conv["kw"], conv["stride"], conv["pad"])
    res2d = None if residual is None else residual.reshape(N * Ho * Wo, conv["c"])
    y = gemm(patches, conv["w"], conv["sb"], C=conv["c"], residual=res2d, relu=relu)
    return y.reshape(N, Ho, Wo, conv["c"])


# ---------------------------------------------------------------------------
# One-time parameter preparation: fold BN, pad + cast weights to bf16
# ---------------------------------------------------------------------------
def _prep_gemm_weights(w, scale, shift):
    K, C = w.shape
    _, Kp, Cp = _gemm_geometry(K, C)
    wp = jnp.pad(w, ((0, Kp - K), (0, Cp - C))).astype(MATMUL_DTYPE)
    sb = jnp.stack([jnp.pad(scale.astype(jnp.float32), (0, Cp - C)),
                    jnp.pad(shift.astype(jnp.float32), (0, Cp - C))])
    return {"w": wp, "sb": sb, "c": C}


def _prep_conv(w, bn, kh, kw, stride, pad):
    scale = bn["gamma"] / jnp.sqrt(bn["var"] + BN_EPS)
    shift = bn["beta"] - bn["mean"] * scale
    d = _prep_gemm_weights(w, scale, shift)
    d.update(kh=kh, kw=kw, stride=stride, pad=pad)
    return d


def _prep_linear(w, b):
    C = w.shape[1]
    return _prep_gemm_weights(w, jnp.ones((C,), jnp.float32), b)


def prepare_params(params):
    enc = params["encoder"]
    block_kind = enc["block"]
    p_enc = {"block": block_kind,
             # Spec stem: 7x7, stride 2, padding 1, no max-pool (matches module).
             "stem": _prep_conv(enc["conv1"], enc["bn1"], 7, 7, 2, 1)}
    p_layers = []
    for layer in enc["layers"]:
        p_blocks = []
        for blk in layer:
            s = blk["stride"]
            if block_kind == "bottleneck":
                pb = {"conv1": _prep_conv(blk["conv1"], blk["bn1"], 1, 1, 1, 0),
                      "conv2": _prep_conv(blk["conv2"], blk["bn2"], 3, 3, s, 1),
                      "conv3": _prep_conv(blk["conv3"], blk["bn3"], 1, 1, 1, 0)}
            else:
                pb = {"conv1": _prep_conv(blk["conv1"], blk["bn1"], 3, 3, s, 1),
                      "conv2": _prep_conv(blk["conv2"], blk["bn2"], 3, 3, 1, 1)}
            pb["shortcut"] = (_prep_conv(blk["sc_conv"], blk["sc_bn"], 1, 1, s, 0)
                              if "sc_conv" in blk else None)
            p_blocks.append(pb)
        p_layers.append(p_blocks)
    p_enc["layers"] = p_layers

    head = params["head"]
    p_head = {"fc1": _prep_linear(head["w1"], head["b1"]),
              "fc2": _prep_linear(head["w2"], head["b2"])}
    return {"encoder": p_enc, "head": p_head}


# ---------------------------------------------------------------------------
# ResNet blocks / SupConResNet forward (backend-parameterized)
# ---------------------------------------------------------------------------
def bottleneck_forward(gemm, x, blk):
    h = conv_bn(gemm, x, blk["conv1"], relu=True)
    h = conv_bn(gemm, h, blk["conv2"], relu=True)
    sc = x if blk["shortcut"] is None else conv_bn(gemm, x, blk["shortcut"], relu=False)
    return conv_bn(gemm, h, blk["conv3"], relu=True, residual=sc)


def basicblock_forward(gemm, x, blk):
    h = conv_bn(gemm, x, blk["conv1"], relu=True)
    sc = x if blk["shortcut"] is None else conv_bn(gemm, x, blk["shortcut"], relu=False)
    return conv_bn(gemm, h, blk["conv2"], relu=True, residual=sc)


def encoder_forward(gemm, x_nhwc, enc):
    h = conv_bn(gemm, x_nhwc, enc["stem"], relu=True)
    block_fn = (bottleneck_forward if enc["block"] == "bottleneck"
                else basicblock_forward)
    for layer in enc["layers"]:
        for blk in layer:
            h = block_fn(gemm, h, blk)
    return h


def supcon_forward(x_nhwc, prepared, gemm, gap, normalize):
    h = encoder_forward(gemm, x_nhwc.astype(MATMUL_DTYPE), prepared["encoder"])
    feat = gap(h)                               # (N, dim_in) f32
    head = prepared["head"]
    h1 = gemm(feat, head["fc1"]["w"], head["fc1"]["sb"], C=head["fc1"]["c"], relu=True)
    h2 = gemm(h1, head["fc2"]["w"], head["fc2"]["sb"], C=head["fc2"]["c"], relu=False)
    return normalize(h2)


# Pure-JAX reference backends (same bf16 storage / bf16 matmul / f32 epilogue path).
def ref_gemm(x, wp, sb, C, residual=None, relu=True):
    M, K = x.shape
    Kp, Cp = wp.shape
    xp = jnp.pad(x.astype(MATMUL_DTYPE), ((0, 0), (0, Kp - K)))
    y = jnp.dot(xp, wp, preferred_element_type=jnp.float32)[:, :C]
    y = y * sb[0, :C] + sb[1, :C]
    if residual is not None:
        y = y + residual.astype(jnp.float32)
    if relu:
        y = jnp.maximum(y, 0.0)
    return y.astype(MATMUL_DTYPE)


def ref_gap(x_nhwc):
    return jnp.mean(x_nhwc.astype(jnp.float32), axis=(1, 2))


def ref_normalize(x):
    x = x.astype(jnp.float32)
    n = jnp.sqrt(jnp.sum(x * x, axis=-1, keepdims=True))
    return x / jnp.maximum(n, NORM_EPS)


# ---------------------------------------------------------------------------
# Parameter construction (deterministic, PyTorch-style init)
# ---------------------------------------------------------------------------
RESNET_CONFIGS = {
    "resnet18": ("basic", [2, 2, 2, 2], 1),
    "resnet34": ("basic", [3, 4, 6, 3], 1),
    "resnet50": ("bottleneck", [3, 4, 6, 3], 4),
    "resnet101": ("bottleneck", [3, 4, 23, 3], 4),
}


def _init_conv(key, kh, kw, cin, cout):
    # kaiming_normal_(mode='fan_out', nonlinearity='relu'); layout (kh*kw*cin, cout)
    std = math.sqrt(2.0 / (cout * kh * kw))
    return std * jax.random.normal(key, (kh * kw * cin, cout), jnp.float32)


def _init_bn(c):
    return dict(gamma=jnp.ones((c,), jnp.float32), beta=jnp.zeros((c,), jnp.float32),
                mean=jnp.zeros((c,), jnp.float32), var=jnp.ones((c,), jnp.float32))


def make_params(key, name="resnet50", in_channel=3, feat_dim=128):
    block_kind, num_blocks, expansion = RESNET_CONFIGS[name]
    keys = iter(jax.random.split(key, 512))

    enc = {"block": block_kind,
           "conv1": _init_conv(next(keys), 7, 7, in_channel, 64),
           "bn1": _init_bn(64)}
    in_planes = 64
    layers = []
    for planes, nblocks, stride in zip((64, 128, 256, 512), num_blocks, (1, 2, 2, 2)):
        blocks = []
        for s in [stride] + [1] * (nblocks - 1):
            out_planes = planes * expansion
            if block_kind == "bottleneck":
                blk = {"stride": s,
                       "conv1": _init_conv(next(keys), 1, 1, in_planes, planes),
                       "bn1": _init_bn(planes),
                       "conv2": _init_conv(next(keys), 3, 3, planes, planes),
                       "bn2": _init_bn(planes),
                       "conv3": _init_conv(next(keys), 1, 1, planes, out_planes),
                       "bn3": _init_bn(out_planes)}
            else:
                blk = {"stride": s,
                       "conv1": _init_conv(next(keys), 3, 3, in_planes, planes),
                       "bn1": _init_bn(planes),
                       "conv2": _init_conv(next(keys), 3, 3, planes, planes),
                       "bn2": _init_bn(planes)}
            if s != 1 or in_planes != out_planes:
                blk["sc_conv"] = _init_conv(next(keys), 1, 1, in_planes, out_planes)
                blk["sc_bn"] = _init_bn(out_planes)
            blocks.append(blk)
            in_planes = out_planes
        layers.append(blocks)
    enc["layers"] = layers
    dim_in = in_planes           # 2048 for resnet50

    k1, k2, k3, k4 = jax.random.split(next(keys), 4)
    bnd = 1.0 / math.sqrt(dim_in)
    head = {"w1": jax.random.uniform(k1, (dim_in, dim_in), jnp.float32, -bnd, bnd),
            "b1": jax.random.uniform(k2, (dim_in,), jnp.float32, -bnd, bnd),
            "w2": jax.random.uniform(k3, (dim_in, feat_dim), jnp.float32, -bnd, bnd),
            "b2": jax.random.uniform(k4, (feat_dim,), jnp.float32, -bnd, bnd)}
    return {"encoder": enc, "head": head}


if __name__ == "__main__":
    key = jax.random.PRNGKey(0)
    k_x, k_p = jax.random.split(key)

    # Small demo: batch=2, 3x32x32 images, SupConResNet('resnet50', head='mlp', feat_dim=128).
    B, C_in, H, W = 2, 3, 32, 32
    feat_dim = 128
    x_nchw = jax.random.normal(k_x, (B, C_in, H, W), jnp.float32)
    x_nhwc = jnp.transpose(x_nchw, (0, 2, 3, 1))     # channels on the lane axis

    raw_params = make_params(k_p, name="resnet50", in_channel=C_in, feat_dim=feat_dim)
    params = prepare_params(raw_params)              # fold BN, pad + cast weights once

    out = supcon_forward(x_nhwc, params, fused_gemm, global_avg_pool, l2_normalize)
    out = jax.block_until_ready(out)
    assert out.shape == (B, feat_dim)

    # Pure-JAX reference of the same math path (bf16 storage, f32 epilogues).
    ref = supcon_forward(x_nhwc, params, ref_gemm, ref_gap, ref_normalize)
    max_err = float(jnp.max(jnp.abs(out - ref)))
    assert jnp.allclose(out, ref, atol=2e-2, rtol=2e-2), f"max abs err {max_err}"
    # projection output is L2-normalized per row
    assert jnp.allclose(jnp.sum(out * out, axis=-1), 1.0, atol=1e-3)

    print("KERNEL_OK")
</pallas_src>

<mosaic_0001>
module attributes {stable_mosaic.version = 11 : i64} {
  func.func @_gemm_kernel(%arg0: i32, %arg1: i32, %arg2: memref<256x256xbf16, #tpu.memory_space<vmem>>, %arg3: memref<256x128xbf16, #tpu.memory_space<vmem>>, %arg4: memref<2x128xf32, #tpu.memory_space<vmem>>, %arg5: memref<256x128xbf16, #tpu.memory_space<vmem>>, %arg6: memref<256x128xf32, #tpu.memory_space<vmem>>) attributes {dimension_semantics = [#tpu.dimension_semantics<parallel>, #tpu.dimension_semantics<arbitrary>], iteration_bounds = array<i64: 2, 1>, scalar_prefetch = 0 : i64, scratch_operands = 1 : i64, tpu.core_type = #tpu.core_type<tc>, window_params = [{transform_indices = @transform_0, window_bounds = array<i64: 256, 256>}, {transform_indices = @transform_1, window_bounds = array<i64: 256, 128>}, {pipeline_mode = #tpu.pipeline_mode<synchronous>, transform_indices = @transform_2, window_bounds = array<i64: 2, 128>}, {transform_indices = @transform_3, window_bounds = array<i64: 256, 128>}]} {
    %c0 = arith.constant 0 : index
    %c0_0 = arith.constant 0 : index
    %0 = vector.load %arg2[%c0, %c0_0] : memref<256x256xbf16, #tpu.memory_space<vmem>>, vector<256x256xbf16>
    %c0_1 = arith.constant 0 : index
    %c0_2 = arith.constant 0 : index
    %1 = vector.load %arg3[%c0_1, %c0_2] : memref<256x128xbf16, #tpu.memory_space<vmem>>, vector<256x128xbf16>
    %cst = arith.constant dense<0.000000e+00> : vector<256x128xf32>
    %2 = tpu.matmul %0, %1, %cst {dimension_numbers = #tpu.dot_dimension_numbers<[1], [0], [0], [1], [0, 0, 1, 1], [], []>} : vector<256x256xbf16>, vector<256x128xbf16>, vector<256x128xf32> -> vector<256x128xf32>
    %c0_i32 = arith.constant 0 : i32
    %3 = arith.cmpi eq, %arg1, %c0_i32 : i32
    %4 = arith.extui %3 : i1 to i32
    %c0_i32_3 = arith.constant 0 : i32
    %5 = arith.cmpi ne, %4, %c0_i32_3 : i32
    scf.if %5 {
      %c0_8 = arith.constant 0 : index
      %c0_9 = arith.constant 0 : index
      %12 = vector.load %arg6[%c0_8, %c0_9] : memref<256x128xf32, #tpu.memory_space<vmem>>, vector<256x128xf32>
      tpu.vector_store %arg6[%c0_8, %c0_9], %2 {strides = array<i32>} : memref<256x128xf32, #tpu.memory_space<vmem>>, vector<256x128xf32>,
    } else {
    }
    %c0_i32_4 = arith.constant 0 : i32
    %6 = arith.cmpi sgt, %arg1, %c0_i32_4 : i32
    %7 = arith.extui %6 : i1 to i32
    %c0_i32_5 = arith.constant 0 : i32
    %8 = arith.cmpi ne, %7, %c0_i32_5 : i32
    scf.if %8 {
      %c0_8 = arith.constant 0 : index
      %c0_9 = arith.constant 0 : index
      %12 = vector.load %arg6[%c0_8, %c0_9] : memref<256x128xf32, #tpu.memory_space<vmem>>, vector<256x128xf32>
      %13 = arith.addf %12, %2 : vector<256x128xf32>
      %c0_10 = arith.constant 0 : index
      %c0_11 = arith.constant 0 : index
      %14 = vector.load %arg6[%c0_10, %c0_11] : memref<256x128xf32, #tpu.memory_space<vmem>>, vector<256x128xf32>
      tpu.vector_store %arg6[%c0_10, %c0_11], %13 {strides = array<i32>} : memref<256x128xf32, #tpu.memory_space<vmem>>, vector<256x128xf32>,
    } else {
    }
    %c0_i32_6 = arith.constant 0 : i32
    %9 = arith.cmpi eq, %arg1, %c0_i32_6 : i32
    %10 = arith.extui %9 : i1 to i32
    %c0_i32_7 = arith.constant 0 : i32
    %11 = arith.cmpi ne, %10, %c0_i32_7 : i32
    scf.if %11 {
      %c0_8 = arith.constant 0 : index
      %c0_9 = arith.constant 0 : index
      %12 = vector.load %arg6[%c0_8, %c0_9] : memref<256x128xf32, #tpu.memory_space<vmem>>, vector<256x128xf32>
      %c0_10 = arith.constant 0 : index
      %c0_11 = arith.constant 0 : index
      %13 = vector.load %arg4[%c0_10, %c0_11] : memref<2x128xf32, #tpu.memory_space<vmem>>, vector<1x128xf32>
      %14 = vector.broadcast %13 : vector<1x128xf32> to vector<256x128xf32>
      %15 = arith.mulf %12, %14 : vector<256x128xf32>
      %c1 = arith.constant 1 : index
      %c0_12 = arith.constant 0 : index
      %16 = vector.load %arg4[%c1, %c0_12] : memref<2x128xf32, #tpu.memory_space<vmem>>, vector<1x128xf32>
      %17 = vector.broadcast %16 : vector<1x128xf32> to vector<256x128xf32>
      %18 = arith.addf %15, %17 : vector<256x128xf32>
      %cst_13 = arith.constant 0.000000e+00 : f32
      %19 = vector.broadcast %cst_13 : f32 to vector<256x128xf32>
      %20 = arith.maximumf %18, %19 : vector<256x128xf32>
      %21 = arith.truncf %20 : vector<256x128xf32> to vector<256x128xbf16>
      %c0_14 = arith.constant 0 : index
      %c0_15 = arith.constant 0 : index
      %22 = vector.load %arg5[%c0_14, %c0_15] : memref<256x128xbf16, #tpu.memory_space<vmem>>, vector<256x128xbf16>
      tpu.vector_store %arg5[%c0_14, %c0_15], %21 {strides = array<i32>} : memref<256x128xbf16, #tpu.memory_space<vmem>>, vector<256x128xbf16>,
    } else {
    }
    return
  }
  func.func @transform_0(%arg0: i32, %arg1: i32) -> (i32, i32) {
    %c0_i32 = arith.constant 0 : i32
    return %arg0, %arg1 : i32, i32
  }
  func.func @transform_1(%arg0: i32, %arg1: i32) -> (i32, i32) {
    %c0_i32 = arith.constant 0 : i32
    %c0_i32_0 = arith.constant 0 : i32
    return %arg1, %c0_i32 : i32, i32
  }
  func.func @transform_2(%arg0: i32, %arg1: i32) -> (i32, i32) {
    %c0_i32 = arith.constant 0 : i32
    %c0_i32_0 = arith.constant 0 : i32
    %c0_i32_1 = arith.constant 0 : i32
    return %c0_i32, %c0_i32_0 : i32, i32
  }
  func.func @transform_3(%arg0: i32, %arg1: i32) -> (i32, i32) {
    %c0_i32 = arith.constant 0 : i32
    %c0_i32_0 = arith.constant 0 : i32
    return %arg0, %c0_i32 : i32, i32
  }
}

</mosaic_0001>

<bundles_post_ra>
// kernel: fused_gemm.1
= control target key start
LH: loop header
LB: loop body
LE: loop exit
PB: predicated region body
PF: predicated region fallthrough
CT: control target
= control target key end

     0   :  { %s1715_s12 = smov 0   ;;  %s1717_s13 = smov 0   ;;  %s1926_s0 = inlined_call_operand.vmem [shape: bf16[512,256], index: 0, kind: input, shape index: {}]   ;;  %s1927_s1 = inlined_call_operand.vmem [shape: bf16[256,128], index: 1, kind: input, shape index: {}]   ;;  %s1928_s2 = inlined_call_operand.vmem [shape: f32[2,128], index: 2, kind: input, shape index: {}]   ;;  %s1929_s3 = inlined_call_operand.vmem [shape: bf16[512,128], index: 3, kind: output, shape index: {}]  }
   0x1   :  { %s1719_s14 = smov 0  }
   0x2 LB: > { %s25_s15 = sadd.s32 1, %s1689_s13  ;;  %p1237_p0 = scmp.ge.s32.totalorder %s1693_s14, 1  ;;  %s1693_s14 = sphi %s1719_s14, %s13_s14   ;;  %s1689_s13 = sphi %s1717_s13, %s1931_s13   ;;  %s1685_s12 = sphi %s1715_s12, %s1930_s12  }
   0x3   : > { %p27_p1 = scmp.ge.s32.totalorder %s25_s15, 2  ;;  %p169_p2 = scmp.lt.s32.totalorder %s1693_s14, 3 }
   0x5   : > { %s1933_s15 = smov (%p27_p1, %s25_s15), 0  ;;  %p170_p3 = pnand %p1237_p0, %p169_p2 }
   0x6   : > { %v1607_v0 = vld [vmem:[%s1927_s1 + $0x40] sm:$0xff] (!%p170_p3)   ;;  %s1238_s18 = sshll.u32 (!%p170_p3), %s1685_s12, 5  ;;  %v1609_v2 = vld [vmem:[%s1927_s1 + $0x48] sm:$0xff] (!%p170_p3)   ;;  %v1611_v4 = vld [vmem:[%s1927_s1 + $0x50] sm:$0xff] (!%p170_p3)  }
   0x7   : > { %173 = sbr.rel (%p170_p3) target bundleno = 322 (0x142), region = 32  ;;  %v1608_v1 = vld [vmem:[%s1927_s1] sm:$0xff] (!%p170_p3)   ;;  %1455 = vmatprep.subr.bf16.mxu0 (!%p170_p3), %v1607_v0  ;;  %1567 = vmatprep.subr.bf16.mxu1 (!%p170_p3), %v1607_v0  ;;  %v1610_v3 = vld [vmem:[%s1927_s1 + $0x8] sm:$0xff] (!%p170_p3)   ;;  %p205_p4 = scmp.lt.s32.totalorder (!%p170_p3), %s1238_s18, 63  ;;  %v1612_v5 = vld [vmem:[%s1927_s1 + $0x10] sm:$0xff] (!%p170_p3)  }
   0x8   : > { %1456 = vmatpush3.bf16.msra.mxu0 (!%p170_p3), %v1608_v1  ;;  %1575 = vmatpush3.bf16.msra.mxu1 (!%p170_p3), %v1608_v1  ;;  %v1613_v6 = vld [vmem:[%s1927_s1 + $0x58] sm:$0xff] (!%p170_p3)   ;;  %v1615_v8 = vld [vmem:[%s1927_s1 + $0x60] sm:$0xff] (!%p170_p3)   ;;  %v1617_v10 = vld [vmem:[%s1927_s1 + $0x68] sm:$0xff] (!%p170_p3)  }
   0x9   : > { %1457 = vmatprep.subr.bf16.mxu0 (!%p170_p3), %v1609_v2  ;;  %1568 = vmatprep.subr.bf16.mxu1 (!%p170_p3), %v1609_v2  ;;  %v1614_v7 = vld [vmem:[%s1927_s1 + $0x18] sm:$0xff] (!%p170_p3)   ;;  %v1616_v9 = vld [vmem:[%s1927_s1 + $0x20] sm:$0xff] (!%p170_p3)   ;;  %v1618_v13 = vld [vmem:[%s1927_s1 + $0x28] sm:$0xff] (!%p170_p3)  }
   0xa   : > { %v1619_v14 = vld [vmem:[%s1927_s1 + $0x70] sm:$0xff] (!%p170_p3)   ;;  %v1621_v16 = vld [vmem:[%s1927_s1 + $0x78] sm:$0xff] (!%p170_p3)   ;;  %v1824_v51 = vld [vmem:[%s1928_s2] ss:$0 sm:$0xff] (!%p170_p3) }
   0xb   : > { %v1620_v15 = vld [vmem:[%s1927_s1 + $0x30] sm:$0xff] (!%p170_p3)   ;;  %v1622_v17 = vld [vmem:[%s1927_s1 + $0x38] sm:$0xff] (!%p170_p3)   ;;  %v1829_v57 = vld [vmem:[%s1928_s2 + $0x1] ss:$0 sm:$0xff] (!%p170_p3) }
   0xc   : > { %1458 = vmatpush3.bf16.msra.mxu0 (!%p170_p3), %v1610_v3  ;;  %1576 = vmatpush3.bf16.msra.mxu1 (!%p170_p3), %v1610_v3 }
   0xd   : > { %1459 = vmatprep.subr.bf16.mxu0 (!%p170_p3), %v1611_v4  ;;  %1569 = vmatprep.subr.bf16.mxu1 (!%p170_p3), %v1611_v4 }
   0xe   : > { %s1935_s18 = smov (!%p205_p4, %s1238_s18), 63 }
   0xf   : > { %s1327_s6 = sshll.u32 %s1935_s18, 3  ;;  %s1242_s7 = sshll.u32 %s1935_s18, 2 }
  0x10   : > { %1460 = vmatpush3.bf16.msra.mxu0 %v1612_v5  ;;  %1577 = vmatpush3.bf16.msra.mxu1 %v1612_v5  ;;  %s1766_s11 = scalar_lea.vmem %s1926_s0, %s1327_s6  ;;  %s1843_s18 = scalar_lea.vmem %s1929_s3, %s1242_s7 }
  0x11   : > { %1461 = vmatprep.subr.bf16.mxu0 %v1613_v6  ;;  %1570 = vmatprep.subr.bf16.mxu1 %v1613_v6  ;;  %v1625_v11 = vld [vmem:[%s1766_s11 + $0x4] ss:$8 sps:$4 sm:$0xff]   ;;  %v1623_v18 = vld [vmem:[%s1766_s11] ss:$8 sps:$4 sm:$0xff]   ;;  %v1629_v20 = vld [vmem:[%s1766_s11 + $0x14] ss:$8 sps:$4 sm:$0xff]  }
  0x12   : > { %v1628_v12 = vld [vmem:[%s1766_s11 + $0x84] ss:$8 sps:$4 sm:$0xff]   ;;  %580 = vmatprep.mubr.bf16.mxu0 %v1625_v11  ;;  %v1626_v19 = vld [vmem:[%s1766_s11 + $0x80] ss:$8 sps:$4 sm:$0xff]   ;;  %v1631_v21 = vld [vmem:[%s1766_s11 + $0x94] ss:$8 sps:$4 sm:$0xff]  }
  0x13   : > { %644 = vmatprep.mubr.bf16.mxu1 %v1628_v12  ;;  %v1633_v22 = vld [vmem:[%s1766_s11 + $0x10] ss:$8 sps:$4 sm:$0xff]   ;;  %v1635_v24 = vld [vmem:[%s1766_s11 + $0x24] ss:$8 sps:$4 sm:$0xff]   ;;  %v1639_v26 = vld [vmem:[%s1766_s11 + $0x20] ss:$8 sps:$4 sm:$0xff]  }
  0x14   : > { %1462 = vmatpush3.bf16.msra.mxu0 %v1614_v7  ;;  %1578 = vmatpush3.bf16.msra.mxu1 %v1614_v7  ;;  %v1634_v23 = vld [vmem:[%s1766_s11 + $0x90] ss:$8 sps:$4 sm:$0xff]   ;;  %v1637_v25 = vld [vmem:[%s1766_s11 + $0xa4] ss:$8 sps:$4 sm:$0xff]   ;;  %v1640_v27 = vld [vmem:[%s1766_s11 + $0xa0] ss:$8 sps:$4 sm:$0xff]  }
  0x15   : > { %1463 = vmatprep.subr.bf16.mxu0 %v1615_v8  ;;  %1571 = vmatprep.subr.bf16.mxu1 %v1615_v8  ;;  %v1641_v28 = vld [vmem:[%s1766_s11 + $0x34] ss:$8 sps:$4 sm:$0xff]   ;;  %v1645_v30 = vld [vmem:[%s1766_s11 + $0x30] ss:$8 sps:$4 sm:$0xff]   ;;  %v1647_v32 = vld [vmem:[%s1766_s11 + $0x44] ss:$8 sps:$4 sm:$0xff]  }
  0x16   : > { %v1643_v29 = vld [vmem:[%s1766_s11 + $0xb4] ss:$8 sps:$4 sm:$0xff]   ;;  %v1646_v31 = vld [vmem:[%s1766_s11 + $0xb0] ss:$8 sps:$4 sm:$0xff]   ;;  %v1649_v33 = vld [vmem:[%s1766_s11 + $0xc4] ss:$8 sps:$4 sm:$0xff]  }
  0x17   : > { %v1651_v34 = vld [vmem:[%s1766_s11 + $0x40] ss:$8 sps:$4 sm:$0xff]   ;;  %v1653_v36 = vld [vmem:[%s1766_s11 + $0x54] ss:$8 sps:$4 sm:$0xff]   ;;  %v1657_v38 = vld [vmem:[%s1766_s11 + $0x50] ss:$8 sps:$4 sm:$0xff]  }
  0x18   : > { %1464 = vmatpush3.bf16.msra.mxu0 %v1616_v9  ;;  %1579 = vmatpush3.bf16.msra.mxu1 %v1616_v9  ;;  %v1652_v35 = vld [vmem:[%s1766_s11 + $0xc0] ss:$8 sps:$4 sm:$0xff]   ;;  %v1655_v37 = vld [vmem:[%s1766_s11 + $0xd4] ss:$8 sps:$4 sm:$0xff]   ;;  %v1658_v39 = vld [vmem:[%s1766_s11 + $0xd0] ss:$8 sps:$4 sm:$0xff]  }
  0x19   : > { %1465 = vmatprep.subr.bf16.mxu0 %v1617_v10  ;;  %1572 = vmatprep.subr.bf16.mxu1 %v1617_v10  ;;  %v1659_v40 = vld [vmem:[%s1766_s11 + $0x64] ss:$8 sps:$4 sm:$0xff]   ;;  %v1663_v42 = vld [vmem:[%s1766_s11 + $0x60] ss:$8 sps:$4 sm:$0xff]   ;;  %v1665_v44 = vld [vmem:[%s1766_s11 + $0x74] ss:$8 sps:$4 sm:$0xff]  }
  0x1a   : > { %v1661_v41 = vld [vmem:[%s1766_s11 + $0xe4] ss:$8 sps:$4 sm:$0xff]   ;;  %v1664_v43 = vld [vmem:[%s1766_s11 + $0xe0] ss:$8 sps:$4 sm:$0xff]   ;;  %v1667_v45 = vld [vmem:[%s1766_s11 + $0xf4] ss:$8 sps:$4 sm:$0xff]  }
  0x1b   : > { %v1669_v46 = vld [vmem:[%s1766_s11 + $0x70] ss:$8 sps:$4 sm:$0xff]  }
  0x1c   : > { %1466 = vmatpush3.bf16.msra.mxu0 %v1618_v13  ;;  %1580 = vmatpush3.bf16.msra.mxu1 %v1618_v13  ;;  %v1670_v47 = vld [vmem:[%s1766_s11 + $0xf0] ss:$8 sps:$4 sm:$0xff]  }
  0x1d   : > { %1467 = vmatprep.subr.bf16.mxu0 %v1619_v14  ;;  %1573 = vmatprep.subr.bf16.mxu1 %v1619_v14 }
  0x20   : > { %1468 = vmatpush3.bf16.msra.mxu0 %v1620_v15  ;;  %1581 = vmatpush3.bf16.msra.mxu1 %v1620_v15 }
  0x21   : > { %1469 = vmatprep.subr.bf16.mxu0 %v1621_v16  ;;  %1574 = vmatprep.subr.bf16.mxu1 %v1621_v16 }
  0x24   : > { %1470 = vmatpush3.bf16.msra.mxu0 %v1622_v17  ;;  %1582 = vmatpush3.bf16.msra.mxu1 %v1622_v17 }
  0x27   : > { %581 = vmatmul.mubr.bf16.vlgmr.msra.gmra.mrb[0].mxu0 %v1623_v18  ;;  %645 = vmatmul.mubr.bf16.vlgmr.msra.gmra.mrb[0].mxu1 %v1626_v19 }
  0x28   : > { %588 = vmatprep.mubr.bf16.mxu0 %v1629_v20  ;;  %652 = vmatprep.mubr.bf16.mxu1 %v1631_v21 }
  0x2f   : > { %589 = vmatmul.mubr.bf16.gmra.mrb[4].mxu0 %v1633_v22  ;;  %653 = vmatmul.mubr.bf16.gmra.mrb[4].mxu1 %v1634_v23 }
  0x30   : > { %596 = vmatprep.mubr.bf16.mxu0 %v1635_v24  ;;  %660 = vmatprep.mubr.bf16.mxu1 %v1637_v25 }
  0x37   : > { %597 = vmatmul.mubr.bf16.gmra.mrb[8].mxu0 %v1639_v26  ;;  %661 = vmatmul.mubr.bf16.gmra.mrb[8].mxu1 %v1640_v27 }
  0x38   : > { %604 = vmatprep.mubr.bf16.mxu0 %v1641_v28  ;;  %668 = vmatprep.mubr.bf16.mxu1 %v1643_v29 }
  0x3f   : > { %605 = vmatmul.mubr.bf16.gmra.mrb[12].mxu0 %v1645_v30  ;;  %669 = vmatmul.mubr.bf16.gmra.mrb[12].mxu1 %v1646_v31 }
  0x40   : > { %612 = vmatprep.mubr.bf16.mxu0 %v1647_v32  ;;  %676 = vmatprep.mubr.bf16.mxu1 %v1649_v33 }
  0x47   : > { %613 = vmatmul.mubr.bf16.gmra.mrb[16].mxu0 %v1651_v34  ;;  %677 = vmatmul.mubr.bf16.gmra.mrb[16].mxu1 %v1652_v35 }
  0x48   : > { %620 = vmatprep.mubr.bf16.mxu0 %v1653_v36  ;;  %684 = vmatprep.mubr.bf16.mxu1 %v1655_v37 }
  0x4f   : > { %621 = vmatmul.mubr.bf16.gmra.mrb[20].mxu0 %v1657_v38  ;;  %685 = vmatmul.mubr.bf16.gmra.mrb[20].mxu1 %v1658_v39 }
  0x50   : > { %628 = vmatprep.mubr.bf16.mxu0 %v1659_v40  ;;  %692 = vmatprep.mubr.bf16.mxu1 %v1661_v41 }
  0x57   : > { %629 = vmatmul.mubr.bf16.gmra.mrb[24].mxu0 %v1663_v42  ;;  %693 = vmatmul.mubr.bf16.gmra.mrb[24].mxu1 %v1664_v43 }
  0x58   : > { %636 = vmatprep.mubr.bf16.mxu0 %v1665_v44  ;;  %700 = vmatprep.mubr.bf16.mxu1 %v1667_v45 }
  0x5f   : > { %637 = vmatmul.mubr.bf16.gmra.mrb[28].mxu0 %v1669_v46  ;;  %701 = vmatmul.mubr.bf16.gmra.mrb[28].mxu1 %v1670_v47 }
  0xfa   : > { %v1471_v48 = vpop.f32.mrb[0].mxu0  ;;  %v1519_v49 = vpop.f32.mrb[0].mxu1 }
  0xfb   : > { %v1472_v50 = vpop.f32.mrb[1].mxu0  ;;  %v1520_v52 = vpop.f32.mrb[1].mxu1 }
  0xfc   : > { %v1473_v53 = vadd.f32 %v1472_v50, %v1471_v48  ;;  %v1521_v54 = vadd.f32 %v1520_v52, %v1519_v49  ;;  %v1474_v55 = vpop.f32.mrb[2].mxu0  ;;  %v1522_v56 = vpop.f32.mrb[2].mxu1 }
  0xfd   : > { %v1475_v58 = vpop.f32.mrb[3].mxu0  ;;  %v1523_v59 = vpop.f32.mrb[3].mxu1 }
  0xfe   : > { %v885_v60 = vmul.f32 %v1473_v53, %v1824_v51  ;;  %v901_v61 = vmul.f32 %v1521_v54, %v1824_v51  ;;  %v1476_v62 = vadd.f32 %v1475_v58, %v1474_v55  ;;  %v1524_v63 = vadd.f32 %v1523_v59, %v1522_v56 }
 0x100   : > { %v922_v0 = vadd.f32 %v1829_v57, %v885_v60  ;;  %v938_v1 = vadd.f32 %v1829_v57, %v901_v61  ;;  %v886_v2 = vmul.f32 %v1476_v62, %v1824_v51  ;;  %v902_v3 = vmul.f32 %v1524_v63, %v1824_v51 }
 0x102   : > { %v923_v4 = vadd.f32 %v1829_v57, %v886_v2  ;;  %v939_v5 = vadd.f32 %v1829_v57, %v902_v3  ;;  %v1477_v6 = vpop.f32.mrb[4].mxu0  ;;  %v1525_v7 = vpop.f32.mrb[4].mxu1  ;;  %v954_v8 = vmax.f32 %v922_v0, 0.0  ;;  %v970_v9 = vmax.f32 %v938_v1, 0.0 }
 0x103   : > { %v1478_v10 = vpop.f32.mrb[5].mxu0  ;;  %v1526_v11 = vpop.f32.mrb[5].mxu1 }
 0x104   : > { %v955_v12 = vmax.f32 %v923_v4, 0.0  ;;  %v971_v13 = vmax.f32 %v939_v5, 0.0  ;;  %v1479_v14 = vadd.f32 %v1478_v10, %v1477_v6  ;;  %v1527_v15 = vadd.f32 %v1526_v11, %v1525_v7  ;;  %v1480_v16 = vpop.f32.mrb[6].mxu0  ;;  %v1528_v17 = vpop.f32.mrb[6].mxu1 }
 0x105   : > { %v1481_v18 = vpop.f32.mrb[7].mxu0  ;;  %v1529_v19 = vpop.f32.mrb[7].mxu1 }
 0x106   : > { %v1363_v20 = vpack.c.bf16 %v955_v12, %v954_v8  ;;  %v1403_v21 = vpack.c.bf16 %v971_v13, %v970_v9  ;;  %v887_v22 = vmul.f32 %v1479_v14, %v1824_v51  ;;  %v903_v23 = vmul.f32 %v1527_v15, %v1824_v51 }
 0x107   : > { %v1482_v24 = vadd.f32 %v1481_v18, %v1480_v16  ;;  %v1530_v25 = vadd.f32 %v1529_v19, %v1528_v17 }
 0x108   : > { %1364 = vst [vmem:[%s1843_s18] sm:$0xff] %v1363_v20   ;;  %1447 = vst [vmem:[%s1843_s18 + $0x40] sm:$0xff] %v1403_v21   ;;  %v924_v26 = vadd.f32 %v1829_v57, %v887_v22  ;;  %v940_v27 = vadd.f32 %v1829_v57, %v903_v23 }
 0x109   : > { %v888_v28 = vmul.f32 %v1482_v24, %v1824_v51  ;;  %v904_v29 = vmul.f32 %v1530_v25, %v1824_v51 }
 0x10a   : > { %v1483_v30 = vpop.f32.mrb[8].mxu0  ;;  %v1531_v31 = vpop.f32.mrb[8].mxu1  ;;  %v956_v40 = vmax.f32 %v924_v26, 0.0  ;;  %v972_v41 = vmax.f32 %v940_v27, 0.0 }
 0x10b   : > { %v925_v32 = vadd.f32 %v1829_v57, %v888_v28  ;;  %v941_v33 = vadd.f32 %v1829_v57, %v904_v29  ;;  %v1484_v34 = vpop.f32.mrb[9].mxu0  ;;  %v1532_v35 = vpop.f32.mrb[9].mxu1 }
 0x10c   : > { %v1485_v36 = vadd.f32 %v1484_v34, %v1483_v30  ;;  %v1533_v37 = vadd.f32 %v1532_v35, %v1531_v31  ;;  %v1486_v38 = vpop.f32.mrb[10].mxu0  ;;  %v1534_v39 = vpop.f32.mrb[10].mxu1 }
 0x10d   : > { %v957_v42 = vmax.f32 %v925_v32, 0.0  ;;  %v973_v43 = vmax.f32 %v941_v33, 0.0  ;;  %v1487_v44 = vpop.f32.mrb[11].mxu0  ;;  %v1535_v45 = vpop.f32.mrb[11].mxu1 }
 0x10e   : > { %v889_v46 = vmul.f32 %v1485_v36, %v1824_v51  ;;  %v905_v47 = vmul.f32 %v1533_v37, %v1824_v51  ;;  %v1488_v48 = vadd.f32 %v1487_v44, %v1486_v38  ;;  %v1536_v49 = vadd.f32 %v1535_v45, %v1534_v39 }
 0x10f   : > { %v1368_v50 = vpack.c.bf16 %v957_v42, %v956_v40  ;;  %v1408_v52 = vpack.c.bf16 %v973_v43, %v972_v41 }
 0x110   : > { %v926_v53 = vadd.f32 %v1829_v57, %v889_v46  ;;  %v942_v54 = vadd.f32 %v1829_v57, %v905_v47  ;;  %v890_v55 = vmul.f32 %v1488_v48, %v1824_v51  ;;  %v906_v56 = vmul.f32 %v1536_v49, %v1824_v51 }
 0x111   : > { %1440 = vst [vmem:[%s1843_s18 + $0x8] sm:$0xff] %v1368_v50   ;;  %1448 = vst [vmem:[%s1843_s18 + $0x48] sm:$0xff] %v1408_v52  }
 0x112   : > { %v927_v58 = vadd.f32 %v1829_v57, %v890_v55  ;;  %v943_v59 = vadd.f32 %v1829_v57, %v906_v56  ;;  %v1489_v60 = vpop.f32.mrb[12].mxu0  ;;  %v1537_v61 = vpop.f32.mrb[12].mxu1  ;;  %v958_v62 = vmax.f32 %v926_v53, 0.0  ;;  %v974_v63 = vmax.f32 %v942_v54, 0.0 }
 0x113   : > { %v1490_v0 = vpop.f32.mrb[13].mxu0  ;;  %v1538_v1 = vpop.f32.mrb[13].mxu1 }
 0x114   : > { %v959_v2 = vmax.f32 %v927_v58, 0.0  ;;  %v975_v3 = vmax.f32 %v943_v59, 0.0  ;;  %v1491_v4 = vadd.f32 %v1490_v0, %v1489_v60  ;;  %v1539_v5 = vadd.f32 %v1538_v1, %v1537_v61  ;;  %v1492_v6 = vpop.f32.mrb[14].mxu0  ;;  %v1540_v7 = vpop.f32.mrb[14].mxu1 }
 0x115   : > { %v1493_v8 = vpop.f32.mrb[15].mxu0  ;;  %v1541_v9 = vpop.f32.mrb[15].mxu1 }
 0x116   : > { %v1373_v10 = vpack.c.bf16 %v959_v2, %v958_v62  ;;  %v1413_v11 = vpack.c.bf16 %v975_v3, %v974_v63  ;;  %v891_v12 = vmul.f32 %v1491_v4, %v1824_v51  ;;  %v907_v13 = vmul.f32 %v1539_v5, %v1824_v51 }
 0x117   : > { %v1494_v14 = vadd.f32 %v1493_v8, %v1492_v6  ;;  %v1542_v15 = vadd.f32 %v1541_v9, %v1540_v7 }
 0x118   : > { %1441 = vst [vmem:[%s1843_s18 + $0x10] sm:$0xff] %v1373_v10   ;;  %1449 = vst [vmem:[%s1843_s18 + $0x50] sm:$0xff] %v1413_v11   ;;  %v928_v16 = vadd.f32 %v1829_v57, %v891_v12  ;;  %v944_v17 = vadd.f32 %v1829_v57, %v907_v13 }
 0x119   : > { %v892_v18 = vmul.f32 %v1494_v14, %v1824_v51  ;;  %v908_v19 = vmul.f32 %v1542_v15, %v1824_v51 }
 0x11a   : > { %v1495_v20 = vpop.f32.mrb[16].mxu0  ;;  %v1543_v21 = vpop.f32.mrb[16].mxu1  ;;  %v960_v30 = vmax.f32 %v928_v16, 0.0  ;;  %v976_v31 = vmax.f32 %v944_v17, 0.0 }
 0x11b   : > { %v929_v22 = vadd.f32 %v1829_v57, %v892_v18  ;;  %v945_v23 = vadd.f32 %v1829_v57, %v908_v19  ;;  %v1496_v24 = vpop.f32.mrb[17].mxu0  ;;  %v1544_v25 = vpop.f32.mrb[17].mxu1 }
 0x11c   : > { %v1497_v26 = vadd.f32 %v1496_v24, %v1495_v20  ;;  %v1545_v27 = vadd.f32 %v1544_v25, %v1543_v21  ;;  %v1498_v28 = vpop.f32.mrb[18].mxu0  ;;  %v1546_v29 = vpop.f32.mrb[18].mxu1 }
 0x11d   : > { %v961_v32 = vmax.f32 %v929_v22, 0.0  ;;  %v977_v33 = vmax.f32 %v945_v23, 0.0  ;;  %v1499_v34 = vpop.f32.mrb[19].mxu0  ;;  %v1547_v35 = vpop.f32.mrb[19].mxu1 }
 0x11e   : > { %v893_v36 = vmul.f32 %v1497_v26, %v1824_v51  ;;  %v909_v37 = vmul.f32 %v1545_v27, %v1824_v51  ;;  %v1500_v38 = vadd.f32 %v1499_v34, %v1498_v28  ;;  %v1548_v39 = vadd.f32 %v1547_v35, %v1546_v29 }
 0x11f   : > { %v1378_v40 = vpack.c.bf16 %v961_v32, %v960_v30  ;;  %v1418_v41 = vpack.c.bf16 %v977_v33, %v976_v31 }
 0x120   : > { %v930_v42 = vadd.f32 %v1829_v57, %v893_v36  ;;  %v946_v43 = vadd.f32 %v1829_v57, %v909_v37  ;;  %v894_v44 = vmul.f32 %v1500_v38, %v1824_v51  ;;  %v910_v45 = vmul.f32 %v1548_v39, %v1824_v51 }
 0x121   : > { %1442 = vst [vmem:[%s1843_s18 + $0x18] sm:$0xff] %v1378_v40   ;;  %1450 = vst [vmem:[%s1843_s18 + $0x58] sm:$0xff] %v1418_v41  }
 0x122   : > { %v931_v46 = vadd.f32 %v1829_v57, %v894_v44  ;;  %v947_v47 = vadd.f32 %v1829_v57, %v910_v45  ;;  %v1501_v48 = vpop.f32.mrb[20].mxu0  ;;  %v1549_v49 = vpop.f32.mrb[20].mxu1  ;;  %v962_v50 = vmax.f32 %v930_v42, 0.0  ;;  %v978_v52 = vmax.f32 %v946_v43, 0.0 }
 0x123   : > { %v1502_v53 = vpop.f32.mrb[21].mxu0  ;;  %v1550_v54 = vpop.f32.mrb[21].mxu1 }
 0x124   : > { %v963_v55 = vmax.f32 %v931_v46, 0.0  ;;  %v979_v56 = vmax.f32 %v947_v47, 0.0  ;;  %v1503_v58 = vadd.f32 %v1502_v53, %v1501_v48  ;;  %v1551_v59 = vadd.f32 %v1550_v54, %v1549_v49  ;;  %v1504_v60 = vpop.f32.mrb[22].mxu0  ;;  %v1552_v61 = vpop.f32.mrb[22].mxu1 }
 0x125   : > { %v1505_v62 = vpop.f32.mrb[23].mxu0  ;;  %v1553_v63 = vpop.f32.mrb[23].mxu1 }
 0x126   : > { %v1383_v0 = vpack.c.bf16 %v963_v55, %v962_v50  ;;  %v1423_v1 = vpack.c.bf16 %v979_v56, %v978_v52  ;;  %v895_v2 = vmul.f32 %v1503_v58, %v1824_v51  ;;  %v911_v3 = vmul.f32 %v1551_v59, %v1824_v51 }
 0x127   : > { %v1506_v4 = vadd.f32 %v1505_v62, %v1504_v60  ;;  %v1554_v5 = vadd.f32 %v1553_v63, %v1552_v61 }
 0x128   : > { %1443 = vst [vmem:[%s1843_s18 + $0x20] sm:$0xff] %v1383_v0   ;;  %1451 = vst [vmem:[%s1843_s18 + $0x60] sm:$0xff] %v1423_v1   ;;  %v932_v6 = vadd.f32 %v1829_v57, %v895_v2  ;;  %v948_v7 = vadd.f32 %v1829_v57, %v911_v3 }
 0x129   : > { %v896_v8 = vmul.f32 %v1506_v4, %v1824_v51  ;;  %v912_v9 = vmul.f32 %v1554_v5, %v1824_v51 }
 0x12a   : > { %v1507_v10 = vpop.f32.mrb[24].mxu0  ;;  %v1555_v11 = vpop.f32.mrb[24].mxu1  ;;  %v964_v20 = vmax.f32 %v932_v6, 0.0  ;;  %v980_v21 = vmax.f32 %v948_v7, 0.0 }
 0x12b   : > { %v933_v12 = vadd.f32 %v1829_v57, %v896_v8  ;;  %v949_v13 = vadd.f32 %v1829_v57, %v912_v9  ;;  %v1508_v14 = vpop.f32.mrb[25].mxu0  ;;  %v1556_v15 = vpop.f32.mrb[25].mxu1 }
 0x12c   : > { %v1509_v16 = vadd.f32 %v1508_v14, %v1507_v10  ;;  %v1557_v17 = vadd.f32 %v1556_v15, %v1555_v11  ;;  %v1510_v18 = vpop.f32.mrb[26].mxu0  ;;  %v1558_v19 = vpop.f32.mrb[26].mxu1 }
 0x12d   : > { %v965_v22 = vmax.f32 %v933_v12, 0.0  ;;  %v981_v23 = vmax.f32 %v949_v13, 0.0  ;;  %v1511_v24 = vpop.f32.mrb[27].mxu0  ;;  %v1559_v25 = vpop.f32.mrb[27].mxu1 }
 0x12e   : > { %v897_v26 = vmul.f32 %v1509_v16, %v1824_v51  ;;  %v913_v27 = vmul.f32 %v1557_v17, %v1824_v51  ;;  %v1512_v28 = vadd.f32 %v1511_v24, %v1510_v18  ;;  %v1560_v29 = vadd.f32 %v1559_v25, %v1558_v19 }
 0x12f   : > { %v1388_v30 = vpack.c.bf16 %v965_v22, %v964_v20  ;;  %v1428_v31 = vpack.c.bf16 %v981_v23, %v980_v21 }
 0x130   : > { %v934_v32 = vadd.f32 %v1829_v57, %v897_v26  ;;  %v950_v33 = vadd.f32 %v1829_v57, %v913_v27  ;;  %v898_v34 = vmul.f32 %v1512_v28, %v1824_v51  ;;  %v914_v35 = vmul.f32 %v1560_v29, %v1824_v51 }
 0x131   : > { %1444 = vst [vmem:[%s1843_s18 + $0x28] sm:$0xff] %v1388_v30   ;;  %1452 = vst [vmem:[%s1843_s18 + $0x68] sm:$0xff] %v1428_v31  }
 0x132   : > { %v935_v36 = vadd.f32 %v1829_v57, %v898_v34  ;;  %v951_v37 = vadd.f32 %v1829_v57, %v914_v35  ;;  %v1513_v38 = vpop.f32.mrb[28].mxu0  ;;  %v1561_v39 = vpop.f32.mrb[28].mxu1  ;;  %v966_v40 = vmax.f32 %v934_v32, 0.0  ;;  %v982_v41 = vmax.f32 %v950_v33, 0.0 }
 0x133   : > { %v1514_v42 = vpop.f32.mrb[29].mxu0  ;;  %v1562_v43 = vpop.f32.mrb[29].mxu1 }
 0x134   : > { %v967_v44 = vmax.f32 %v935_v36, 0.0  ;;  %v983_v45 = vmax.f32 %v951_v37, 0.0  ;;  %v1515_v46 = vadd.f32 %v1514_v42, %v1513_v38  ;;  %v1563_v47 = vadd.f32 %v1562_v43, %v1561_v39  ;;  %v1516_v48 = vpop.f32.mrb[30].mxu0  ;;  %v1564_v49 = vpop.f32.mrb[30].mxu1 }
 0x135   : > { %v1517_v50 = vpop.f32.mrb[31].mxu0  ;;  %v1565_v52 = vpop.f32.mrb[31].mxu1 }
 0x136   : > { %v1393_v53 = vpack.c.bf16 %v967_v44, %v966_v40  ;;  %v1433_v54 = vpack.c.bf16 %v983_v45, %v982_v41  ;;  %v899_v55 = vmul.f32 %v1515_v46, %v1824_v51  ;;  %v915_v56 = vmul.f32 %v1563_v47, %v1824_v51 }
 0x137   : > { %v1518_v58 = vadd.f32 %v1517_v50, %v1516_v48  ;;  %v1566_v59 = vadd.f32 %v1565_v52, %v1564_v49 }
 0x138   : > { %1445 = vst [vmem:[%s1843_s18 + $0x30] sm:$0xff] %v1393_v53   ;;  %1453 = vst [vmem:[%s1843_s18 + $0x70] sm:$0xff] %v1433_v54   ;;  %v936_v60 = vadd.f32 %v1829_v57, %v899_v55  ;;  %v952_v61 = vadd.f32 %v1829_v57, %v915_v56 }
 0x139   : > { %v900_v62 = vmul.f32 %v1518_v58, %v1824_v51  ;;  %v916_v63 = vmul.f32 %v1566_v59, %v1824_v51 }
 0x13a   : > { %v968_v2 = vmax.f32 %v936_v60, 0.0  ;;  %v984_v3 = vmax.f32 %v952_v61, 0.0 }
 0x13b   : > { %v937_v0 = vadd.f32 %v1829_v57, %v900_v62  ;;  %v953_v1 = vadd.f32 %v1829_v57, %v916_v63 }
 0x13d   : > { %v969_v4 = vmax.f32 %v937_v0, 0.0  ;;  %v985_v5 = vmax.f32 %v953_v1, 0.0 }
 0x13f   : > { %v1398_v6 = vpack.c.bf16 %v969_v4, %v968_v2  ;;  %v1438_v7 = vpack.c.bf16 %v985_v5, %v984_v3 }
 0x141   : > { %1446 = vst [vmem:[%s1843_s18 + $0x38] sm:$0xff] %v1398_v6   ;;  %1454 = vst [vmem:[%s1843_s18 + $0x78] sm:$0xff] %v1438_v7  }
 0x142 PF: > { %s13_s14 = sadd.s32 1, %s1693_s14   ;;  %s1930_s12 = smov %s1689_s13 }
 0x143   : > { %p10_p5 = scmp.ge.s32.totalorder %s13_s14, 4   ;;  %s1931_s13 = smov %s1933_s15 }
 0x145   :  { %12 = sbr.rel (!%p10_p5) target bundleno = 2 (0x2), region = 77 }

</bundles_post_ra>
